<compile_context>
chip_gen: v6e
topology: v6e:2x2x1
jax: 0.10.0
libtpu: 0.0.40
codegen_flags: <defaults>
</compile_context>

<pallas_src>
import functools

import jax
import jax.numpy as jnp
from jax.experimental import pallas as pl
from jax.experimental.pallas import tpu as pltpu

_LANE = 128


def _round_up(n, m):
    return ((n + m - 1) // m) * m


def _classifier_kernel(x_ref, w_ref, rows_ref, out_ref, *,
                       num_hidden, use_bn, to_prob, outnum, batch):
    """Single-grid-point fused MLP; everything resident in VMEM.

    x_ref    : (B, W)        f32 input, zero-padded to W lanes
    w_ref    : (L+1, W, W)   f32 weights, pre-transposed to (in, out), zero-padded
    rows_ref : (R, W)        f32, one param vector per sublane row:
                             use_bn : gamma0, beta0, gamma1, beta1, ..., final_bias
                             else   : bias0, bias1, ..., final_bias
    out_ref  : (B, W)        f32 lane-dense output; wrapper slices [:, :outnum]
    """
    W = out_ref.shape[-1]
    h = x_ref[...].astype(jnp.float32)

    inv_b = jnp.float32(1.0 / batch)
    ones_row = jnp.ones((1, batch), jnp.float32)   # hoisted: reused by every BN layer

    row = 0
    for i in range(num_hidden):
        # Full padded (W, W) weight tile: straight MXU push, no sub-tile slicing.
        h = jnp.dot(h, w_ref[i], preferred_element_type=jnp.float32)
        if use_bn:
            gamma = rows_ref[row]        # zero-padded beyond dout -> pad cols stay 0
            beta = rows_ref[row + 1]
            row += 2
            # Training-mode BatchNorm1d (biased variance, eps=1e-5). Both sums
            # from ONE MXU matmul: ones(1,B) @ [h | h*h] -> (1, 2W).
            sums = jnp.dot(ones_row, jnp.concatenate([h, h * h], axis=1),
                           preferred_element_type=jnp.float32)
            mean = sums[:, :W] * inv_b
            var = jnp.maximum(sums[:, W:] * inv_b - mean * mean, 0.0)
            scale = gamma * jax.lax.rsqrt(var + 1e-5)   # EUP rsqrt
            shift = beta - mean * scale
            h = h * scale + shift
        else:
            h = h + rows_ref[row]
            row += 1
            # TODO(synk): nn.Dropout (drop_out=True) branch not implemented;
            # would need pltpu.prng_seed / pltpu.prng_random_bits.
        h = jnp.maximum(h, 0.0)          # ReLU

    h = jnp.dot(h, w_ref[num_hidden], preferred_element_type=jnp.float32) + rows_ref[row]

    if to_prob:
        if outnum == 1:
            h = jax.nn.sigmoid(h)
        else:
            # Mask padded lanes so softmax normalizes over the real classes only.
            lane = jax.lax.broadcasted_iota(jnp.int32, h.shape, 1)
            h = jnp.where(lane < outnum, h, -jnp.inf)
            h = jax.nn.softmax(h, axis=-1)

    out_ref[...] = h.astype(out_ref.dtype)


def init_classifier_params(key, feature_size, repeat_num, class_num, use_bn):
    """PyTorch-convention parameters (same shapes as Classifier.__init__)."""
    outnum = class_num if class_num > 2 else 1
    layers = []
    curdim = feature_size
    for _ in range(repeat_num):
        key, k1, k2 = jax.random.split(key, 3)
        bound = 1.0 / (curdim ** 0.5)
        w = jax.random.uniform(k1, (curdim // 2, curdim), jnp.float32, -bound, bound)
        b = jax.random.uniform(k2, (1, curdim // 2), jnp.float32, -bound, bound)
        curdim //= 2
        layer = {"w": w, "b": b}
        if use_bn:
            layer["gamma"] = jnp.ones((1, curdim), jnp.float32)   # BN affine init
            layer["beta"] = jnp.zeros((1, curdim), jnp.float32)
        layers.append(layer)
    key, k1, k2 = jax.random.split(key, 3)
    bound = 1.0 / (curdim ** 0.5)
    wf = jax.random.uniform(k1, (outnum, curdim), jnp.float32, -bound, bound)
    bf = jax.random.uniform(k2, (1, outnum), jnp.float32, -bound, bound)
    return layers, {"w": wf, "b": bf}, outnum


def pack_params(layers, final, use_bn, feature_size):
    """Pack into lane-aligned buffers: w (L+1, W, W) and rows (R, W), W mult. of 128."""
    all_w = [l["w"] for l in layers] + [final["w"]]          # PyTorch (out, in)
    dims = [feature_size] + [w.shape[0] for w in all_w]
    W = max(_round_up(d, _LANE) for d in dims)               # fixed lane-aligned width

    w_stack = []
    for w in all_w:
        wt = w.T.astype(jnp.float32)                         # pre-transpose -> (in, out)
        w_stack.append(
            jnp.zeros((W, W), jnp.float32).at[:wt.shape[0], :wt.shape[1]].set(wt))
    w_packed = jnp.stack(w_stack, axis=0)                    # (L+1, W, W)

    rows = []
    for l in layers:
        if use_bn:
            rows += [l["gamma"], l["beta"]]                  # bias dropped (cancelled by BN)
        else:
            rows += [l["b"]]
    rows += [final["b"]]
    n_rows = _round_up(len(rows), 8)                         # sublane-align
    # ZERO padding everywhere (including gamma!) so padded columns stay 0.
    rows_packed = jnp.zeros((n_rows, W), jnp.float32)
    for k, r in enumerate(rows):
        rows_packed = rows_packed.at[k, :r.shape[1]].set(r[0].astype(jnp.float32))
    return w_packed, rows_packed, W


def classifier_forward(x, w_packed, rows_packed, *, repeat_num, use_bn, to_prob, outnum):
    batch, feat = x.shape
    W = w_packed.shape[-1]
    x_padded = x if feat == W else jnp.pad(x, ((0, 0), (0, W - feat)))

    kernel = functools.partial(
        _classifier_kernel, num_hidden=repeat_num, use_bn=use_bn,
        to_prob=to_prob, outnum=outnum, batch=batch)

    # Single grid point; 3 input DMAs + 1 lane-dense output DMA, all < ~256 KiB
    # (far below even v7x's 32 MiB scoped-VMEM default -> no vmem_limit_bytes).
    # NOTE (v7x): to use both TensorCores, add a leading "parallel" grid axis
    # over INDEPENDENT problems (multiple heads / independent batch shards) --
    # not over the BN batch, whose train-mode statistics must span the full batch.
    out_padded = pl.pallas_call(
        kernel,
        out_shape=jax.ShapeDtypeStruct((batch, W), jnp.float32),
        in_specs=[pl.BlockSpec(memory_space=pltpu.MemorySpace.VMEM)] * 3,
        out_specs=pl.BlockSpec(memory_space=pltpu.MemorySpace.VMEM),
    )(x_padded, w_packed, rows_packed)
    return out_padded[:, :outnum]


def _reference_forward(x, layers, final, *, use_bn, to_prob, outnum):
    """Pure-JAX reference with full PyTorch semantics (including pre-BN biases)."""
    h = x.astype(jnp.float32)
    for l in layers:
        h = h @ l["w"].T + l["b"]
        if use_bn:
            mean = jnp.mean(h, axis=0, keepdims=True)
            var = jnp.mean((h - mean) ** 2, axis=0, keepdims=True)
            h = l["gamma"] * (h - mean) / jnp.sqrt(var + 1e-5) + l["beta"]
        h = jnp.maximum(h, 0.0)
    h = h @ final["w"].T + final["b"]
    if to_prob:
        h = jax.nn.sigmoid(h) if outnum == 1 else jax.nn.softmax(h, axis=-1)
    return h


if __name__ == "__main__":
    # Classifier(feature_size=32, repeat_num=2, class_num=2, to_prob=False, use_bn=True)
    feature_size = 32
    repeat_num = 2
    class_num = 2
    use_bn = True
    to_prob = False
    batch = 8

    key = jax.random.PRNGKey(0)
    key, xkey, pkey = jax.random.split(key, 3)
    x = jax.random.normal(xkey, (batch, feature_size), jnp.float32)

    layers, final, outnum = init_classifier_params(
        pkey, feature_size, repeat_num, class_num, use_bn)
    w_packed, rows_packed, W = pack_params(layers, final, use_bn, feature_size)

    out = classifier_forward(
        x, w_packed, rows_packed,
        repeat_num=repeat_num, use_bn=use_bn, to_prob=to_prob, outnum=outnum)
    out = jax.block_until_ready(out)

    ref = _reference_forward(
        x, layers, final, use_bn=use_bn, to_prob=to_prob, outnum=outnum)
    assert out.shape == (batch, outnum)
    assert jnp.allclose(out, ref, atol=1e-4, rtol=1e-4), "mismatch vs JAX reference"

    print("KERNEL_OK")
</pallas_src>

<mosaic_0001>
module attributes {stable_mosaic.version = 11 : i64} {
  func.func @_classifier_kernel(%arg0: memref<8x128xf32, #tpu.memory_space<vmem>>, %arg1: memref<3x128x128xf32, #tpu.memory_space<vmem>>, %arg2: memref<8x128xf32, #tpu.memory_space<vmem>>, %arg3: memref<8x128xf32, #tpu.memory_space<vmem>>) attributes {dimension_semantics = [], scalar_prefetch = 0 : i64, scratch_operands = 0 : i64, tpu.core_type = #tpu.core_type<tc>} {
    %c0 = arith.constant 0 : index
    %c0_0 = arith.constant 0 : index
    %0 = vector.load %arg0[%c0, %c0_0] : memref<8x128xf32, #tpu.memory_space<vmem>>, vector<8x128xf32>
    %cst = arith.constant 1.000000e+00 : f32
    %1 = vector.broadcast %cst : f32 to vector<1x8xf32>
    %c0_1 = arith.constant 0 : index
    %c0_2 = arith.constant 0 : index
    %c0_3 = arith.constant 0 : index
    %2 = vector.load %arg1[%c0_1, %c0_2, %c0_3] : memref<3x128x128xf32, #tpu.memory_space<vmem>>, vector<1x128x128xf32>
    %3 = vector.shape_cast %2 : vector<1x128x128xf32> to vector<128x128xf32>
    %cst_4 = arith.constant dense<0.000000e+00> : vector<8x128xf32>
    %4 = tpu.matmul %0, %3, %cst_4 {dimension_numbers = #tpu.dot_dimension_numbers<[1], [0], [0], [1], [0, 0, 1, 1], [], []>} : vector<8x128xf32>, vector<128x128xf32>, vector<8x128xf32> -> vector<8x128xf32>
    %c0_5 = arith.constant 0 : index
    %c0_6 = arith.constant 0 : index
    %5 = vector.load %arg2[%c0_5, %c0_6] : memref<8x128xf32, #tpu.memory_space<vmem>>, vector<1x128xf32>
    %6 = vector.shape_cast %5 : vector<1x128xf32> to vector<128xf32>
    %c1 = arith.constant 1 : index
    %c0_7 = arith.constant 0 : index
    %7 = vector.load %arg2[%c1, %c0_7] : memref<8x128xf32, #tpu.memory_space<vmem>>, vector<1x128xf32>
    %8 = vector.shape_cast %7 : vector<1x128xf32> to vector<128xf32>
    %9 = arith.mulf %4, %4 : vector<8x128xf32>
    %10 = tpu.concatenate %4, %9 in 1 : vector<8x128xf32>, vector<8x128xf32> -> vector<8x256xf32>
    %cst_8 = arith.constant dense<0.000000e+00> : vector<1x256xf32>
    %11 = tpu.matmul %1, %10, %cst_8 {dimension_numbers = #tpu.dot_dimension_numbers<[1], [0], [0], [1], [0, 0, 1, 1], [], []>} : vector<1x8xf32>, vector<8x256xf32>, vector<1x256xf32> -> vector<1x256xf32>
    %12 = vector.extract_strided_slice %11 {offsets = [0, 0], sizes = [1, 128], strides = [1, 1]} : vector<1x256xf32> to vector<1x128xf32>
    %cst_9 = arith.constant 1.250000e-01 : f32
    %13 = vector.broadcast %cst_9 : f32 to vector<1x128xf32>
    %14 = arith.mulf %12, %13 : vector<1x128xf32>
    %15 = vector.extract_strided_slice %11 {offsets = [0, 128], sizes = [1, 128], strides = [1, 1]} : vector<1x256xf32> to vector<1x128xf32>
    %cst_10 = arith.constant 1.250000e-01 : f32
    %16 = vector.broadcast %cst_10 : f32 to vector<1x128xf32>
    %17 = arith.mulf %15, %16 : vector<1x128xf32>
    %18 = arith.mulf %14, %14 : vector<1x128xf32>
    %19 = arith.subf %17, %18 : vector<1x128xf32>
    %cst_11 = arith.constant 0.000000e+00 : f32
    %20 = vector.broadcast %cst_11 : f32 to vector<1x128xf32>
    %21 = arith.maximumf %19, %20 : vector<1x128xf32>
    %cst_12 = arith.constant 9.99999974E-6 : f32
    %22 = vector.broadcast %cst_12 : f32 to vector<1x128xf32>
    %23 = arith.addf %21, %22 : vector<1x128xf32>
    %24 = math.rsqrt %23 : vector<1x128xf32>
    %25 = vector.shape_cast %6 : vector<128xf32> to vector<1x128xf32>
    %26 = arith.mulf %25, %24 : vector<1x128xf32>
    %27 = arith.mulf %14, %26 : vector<1x128xf32>
    %28 = vector.shape_cast %8 : vector<128xf32> to vector<1x128xf32>
    %29 = arith.subf %28, %27 : vector<1x128xf32>
    %30 = vector.broadcast %26 : vector<1x128xf32> to vector<8x128xf32>
    %31 = arith.mulf %4, %30 : vector<8x128xf32>
    %32 = vector.broadcast %29 : vector<1x128xf32> to vector<8x128xf32>
    %33 = arith.addf %31, %32 : vector<8x128xf32>
    %cst_13 = arith.constant 0.000000e+00 : f32
    %34 = vector.broadcast %cst_13 : f32 to vector<8x128xf32>
    %35 = arith.maximumf %33, %34 : vector<8x128xf32>
    %c1_14 = arith.constant 1 : index
    %c0_15 = arith.constant 0 : index
    %c0_16 = arith.constant 0 : index
    %36 = vector.load %arg1[%c1_14, %c0_15, %c0_16] : memref<3x128x128xf32, #tpu.memory_space<vmem>>, vector<1x128x128xf32>
    %37 = vector.shape_cast %36 : vector<1x128x128xf32> to vector<128x128xf32>
    %cst_17 = arith.constant dense<0.000000e+00> : vector<8x128xf32>
    %38 = tpu.matmul %35, %37, %cst_17 {dimension_numbers = #tpu.dot_dimension_numbers<[1], [0], [0], [1], [0, 0, 1, 1], [], []>} : vector<8x128xf32>, vector<128x128xf32>, vector<8x128xf32> -> vector<8x128xf32>
    %c2 = arith.constant 2 : index
    %c0_18 = arith.constant 0 : index
    %39 = vector.load %arg2[%c2, %c0_18] : memref<8x128xf32, #tpu.memory_space<vmem>>, vector<1x128xf32>
    %40 = vector.shape_cast %39 : vector<1x128xf32> to vector<128xf32>
    %c3 = arith.constant 3 : index
    %c0_19 = arith.constant 0 : index
    %41 = vector.load %arg2[%c3, %c0_19] : memref<8x128xf32, #tpu.memory_space<vmem>>, vector<1x128xf32>
    %42 = vector.shape_cast %41 : vector<1x128xf32> to vector<128xf32>
    %43 = arith.mulf %38, %38 : vector<8x128xf32>
    %44 = tpu.concatenate %38, %43 in 1 : vector<8x128xf32>, vector<8x128xf32> -> vector<8x256xf32>
    %cst_20 = arith.constant dense<0.000000e+00> : vector<1x256xf32>
    %45 = tpu.matmul %1, %44, %cst_20 {dimension_numbers = #tpu.dot_dimension_numbers<[1], [0], [0], [1], [0, 0, 1, 1], [], []>} : vector<1x8xf32>, vector<8x256xf32>, vector<1x256xf32> -> vector<1x256xf32>
    %46 = vector.extract_strided_slice %45 {offsets = [0, 0], sizes = [1, 128], strides = [1, 1]} : vector<1x256xf32> to vector<1x128xf32>
    %cst_21 = arith.constant 1.250000e-01 : f32
    %47 = vector.broadcast %cst_21 : f32 to vector<1x128xf32>
    %48 = arith.mulf %46, %47 : vector<1x128xf32>
    %49 = vector.extract_strided_slice %45 {offsets = [0, 128], sizes = [1, 128], strides = [1, 1]} : vector<1x256xf32> to vector<1x128xf32>
    %cst_22 = arith.constant 1.250000e-01 : f32
    %50 = vector.broadcast %cst_22 : f32 to vector<1x128xf32>
    %51 = arith.mulf %49, %50 : vector<1x128xf32>
    %52 = arith.mulf %48, %48 : vector<1x128xf32>
    %53 = arith.subf %51, %52 : vector<1x128xf32>
    %cst_23 = arith.constant 0.000000e+00 : f32
    %54 = vector.broadcast %cst_23 : f32 to vector<1x128xf32>
    %55 = arith.maximumf %53, %54 : vector<1x128xf32>
    %cst_24 = arith.constant 9.99999974E-6 : f32
    %56 = vector.broadcast %cst_24 : f32 to vector<1x128xf32>
    %57 = arith.addf %55, %56 : vector<1x128xf32>
    %58 = math.rsqrt %57 : vector<1x128xf32>
    %59 = vector.shape_cast %40 : vector<128xf32> to vector<1x128xf32>
    %60 = arith.mulf %59, %58 : vector<1x128xf32>
    %61 = arith.mulf %48, %60 : vector<1x128xf32>
    %62 = vector.shape_cast %42 : vector<128xf32> to vector<1x128xf32>
    %63 = arith.subf %62, %61 : vector<1x128xf32>
    %64 = vector.broadcast %60 : vector<1x128xf32> to vector<8x128xf32>
    %65 = arith.mulf %38, %64 : vector<8x128xf32>
    %66 = vector.broadcast %63 : vector<1x128xf32> to vector<8x128xf32>
    %67 = arith.addf %65, %66 : vector<8x128xf32>
    %cst_25 = arith.constant 0.000000e+00 : f32
    %68 = vector.broadcast %cst_25 : f32 to vector<8x128xf32>
    %69 = arith.maximumf %67, %68 : vector<8x128xf32>
    %c2_26 = arith.constant 2 : index
    %c0_27 = arith.constant 0 : index
    %c0_28 = arith.constant 0 : index
    %70 = vector.load %arg1[%c2_26, %c0_27, %c0_28] : memref<3x128x128xf32, #tpu.memory_space<vmem>>, vector<1x128x128xf32>
    %71 = vector.shape_cast %70 : vector<1x128x128xf32> to vector<128x128xf32>
    %cst_29 = arith.constant dense<0.000000e+00> : vector<8x128xf32>
    %72 = tpu.matmul %69, %71, %cst_29 {dimension_numbers = #tpu.dot_dimension_numbers<[1], [0], [0], [1], [0, 0, 1, 1], [], []>} : vector<8x128xf32>, vector<128x128xf32>, vector<8x128xf32> -> vector<8x128xf32>
    %c4 = arith.constant 4 : index
    %c0_30 = arith.constant 0 : index
    %73 = vector.load %arg2[%c4, %c0_30] : memref<8x128xf32, #tpu.memory_space<vmem>>, vector<1x128xf32>
    %74 = vector.shape_cast %73 : vector<1x128xf32> to vector<128xf32>
    %75 = vector.shape_cast %74 : vector<128xf32> to vector<1x128xf32>
    %76 = vector.broadcast %75 : vector<1x128xf32> to vector<8x128xf32>
    %77 = arith.addf %72, %76 : vector<8x128xf32>
    %c0_31 = arith.constant 0 : index
    %c0_32 = arith.constant 0 : index
    %78 = vector.load %arg3[%c0_31, %c0_32] : memref<8x128xf32, #tpu.memory_space<vmem>>, vector<8x128xf32>
    tpu.vector_store %arg3[%c0_31, %c0_32], %77 {strides = array<i32>} : memref<8x128xf32, #tpu.memory_space<vmem>>, vector<8x128xf32>,
    return
  }
}

</mosaic_0001>

<bundles_post_ra>
// kernel: tpu_custom_call.1
= control target key start
LH: loop header
LB: loop body
LE: loop exit
PB: predicated region body
PF: predicated region fallthrough
CT: control target
= control target key end

     0   :  { %8 = vsyncpa [#allocation3], 0  ;;  %s906_s0 = inlined_call_operand.hbm [shape: f32[8,128], index: 0, kind: input, shape index: {}]   ;;  %s907_s1 = inlined_call_operand.hbm [shape: f32[3,128,128], index: 1, kind: input, shape index: {}]   ;;  %s908_s2 = inlined_call_operand.hbm [shape: f32[8,128], index: 2, kind: input, shape index: {}]   ;;  %s909_s3 = inlined_call_operand.hbm [shape: f32[8,128], index: 3, kind: output, shape index: {}]  }
   0x1   :  { %9 = vsyncpa [#allocation6], 0 }
   0x2   :  { %10 = vsyncpa [#allocation4], 0  ;;  %s787_s12 = smov [#allocation5]  }
   0x3   :  { %s26_s13 = sshll.u32 %s787_s12, 4  ;;  %s27_s13 = int_to_ptr.vmem [resolvable:$true] %s26_s13 }
   0x4   :  { %s709_s14 = scalar_lea.vmem %s27_s13, 6144  ;;  %p714_p1 = scmp.lt.s32.totalorder %s27_s13, %s27_s13 }
   0x5   :  { %p710_p0 = scmp.ne.s32.totalorder %s27_s13, %s709_s14  ;;  %p715_p2 = scmp.lt.s32.totalorder %s709_s14, %s709_s14 }
   0x7   :  { %p716_p3 = por %p715_p2, %p714_p1 }
   0x9   :  { %p717_p4 = pnand %p716_p3, %p710_p0 }
   0xb   :  { %720 = shalt.err (!%p717_p4)
}
   0xc   :  { %s788_s15 = smov 128   ;;  %s789_s16 = smov 8  }
   0xd   :  { %32 = dma.hbm_to_vmem [thread:$0]  %s907_s1, 6144, %s27_s13, [#allocation6], %s788_s15, %s788_s15, %s789_s16  }
   0xe   :  { %s790_s19 = smov [#allocation2]   ;;  %s791_s21 = smov [#allocation7]  }
   0xf   :  { %s17_s20 = sshll.u32 %s790_s19, 4  ;;  %s39_s22 = sshll.u32 %s791_s21, 4  ;;  %s18_s20 = int_to_ptr.vmem [resolvable:$true] %s17_s20  ;;  %s40_s22 = int_to_ptr.vmem [resolvable:$true] %s39_s22 }
  0x10   :  { %s729_s23 = scalar_lea.vmem %s18_s20, 128  ;;  %p734_p6 = scmp.lt.s32.totalorder %s18_s20, %s18_s20 }
  0x11   :  { %p730_p5 = scmp.ne.s32.totalorder %s18_s20, %s729_s23  ;;  %p735_p7 = scmp.lt.s32.totalorder %s729_s23, %s729_s23 }
  0x13   :  { %p736_p8 = por %p735_p7, %p734_p6 }
  0x15   :  { %p737_p9 = pnand %p736_p8, %p730_p5 }
  0x17   :  { %740 = shalt.err (!%p737_p9)
}
  0x18   :  { %20 = dma.hbm_to_vmem [thread:$0]  %s906_s0, 128, %s18_s20, [#allocation3]  }
  0x19   :  { %s749_s26 = scalar_lea.vmem %s40_s22, 128  ;;  %p754_p11 = scmp.lt.s32.totalorder %s40_s22, %s40_s22 }
  0x1a   :  { %p750_p10 = scmp.ne.s32.totalorder %s40_s22, %s749_s26  ;;  %p755_p12 = scmp.lt.s32.totalorder %s749_s26, %s749_s26 }
  0x1c   :  { %p756_p13 = por %p755_p12, %p754_p11 }
  0x1e   :  { %p757_p0 = pnand %p756_p13, %p750_p10 }
  0x20   :  { %760 = shalt.err (!%p757_p0)
}
  0x21   :  { %42 = dma.hbm_to_vmem [thread:$0]  %s908_s2, 128, %s40_s22, [#allocation6]  }
  0x22   :  { %781 = dma.done.wait [#allocation3], 128  }
  0x23   :  { %782 = vsyncadd [#allocation3], 4294967168 }
  0x24   :  { %783 = dma.done.wait [#allocation6], 6272  }
  0x25   :  { %784 = vsyncadd [#allocation6], 4294961024  ;;  %v792_v0 = vmov 0.0   ;;  %vm793_vm0 = vmmov 0   ;;  %v68_v1 = vld [vmem:[#allocation5 + $0x78] sm:$0xff]  ;;  %v67_v2 = vld [vmem:[#allocation5 + $0x70] sm:$0xff]  ;;  %v227_v46 = vlaneseq }
  0x26   :  { %583 = vmatprep.subr.mxu0 %v792_v0  ;;  %615 = vmatprep.mubr.msk.f32.mxu0 %vm793_vm0, %v792_v0  ;;  %v66_v3 = vld [vmem:[#allocation5 + $0x68] sm:$0xff]  ;;  %v65_v4 = vld [vmem:[#allocation5 + $0x60] sm:$0xff]  ;;  %v64_v5 = vld [vmem:[#allocation5 + $0x58] sm:$0xff]  ;;  %vm142_vm1 = vcmask 64512   ;;  %v794_v21 = vmov 1.0   ;;  %s795_s0 = smov [#allocation8]  }
  0x27   :  { %618 = vmatprep.subr.mxu1 %v792_v0  ;;  %650 = vmatprep.mubr.msk.f32.mxu1 %vm793_vm0, %v792_v0  ;;  %v63_v6 = vld [vmem:[#allocation5 + $0x50] sm:$0xff]  ;;  %v62_v7 = vld [vmem:[#allocation5 + $0x48] sm:$0xff]  ;;  %v61_v8 = vld [vmem:[#allocation5 + $0x40] sm:$0xff]  ;;  %v228_v47 = vshrl.u32 %v227_v46, 7  ;;  %s519_s2 = sshll.u32 %s795_s0, 4  ;;  %s520_s2 = int_to_ptr.vmem [resolvable:$true] %s519_s2 }
  0x28   :  { %584 = vmatpush3.msra.mxu0 %v68_v1  ;;  %v60_v9 = vld [vmem:[#allocation5 + $0x38] sm:$0xff]  ;;  %v59_v10 = vld [vmem:[#allocation5 + $0x30] sm:$0xff]  ;;  %v58_v11 = vld [vmem:[#allocation5 + $0x28] sm:$0xff]  ;;  %s761_s28 = scalar_lea.vmem %s520_s2, 128  ;;  %p766_p2 = scmp.lt.s32.totalorder %s520_s2, %s520_s2 }
  0x29   :  { %585 = vmatprep.subr.mxu0 %v792_v0  ;;  %v57_v12 = vld [vmem:[#allocation5 + $0x20] sm:$0xff]  ;;  %v56_v13 = vld [vmem:[#allocation5 + $0x18] sm:$0xff]  ;;  %v55_v14 = vld [vmem:[#allocation5 + $0x10] sm:$0xff]  ;;  %v871_v49 = vsub.s32 0, %v228_v47  ;;  %p762_p1 = scmp.ne.s32.totalorder %s520_s2, %s761_s28  ;;  %p767_p3 = scmp.lt.s32.totalorder %s761_s28, %s761_s28 }
  0x2a   :  { %586 = vmatpush3.msra.mxu0 %v67_v2  ;;  %v54_v15 = vld [vmem:[#allocation5 + $0x8] sm:$0xff]  ;;  %v53_v16 = vld [vmem:[#allocation5] sm:$0xff]  ;;  %v52_v17 = vld [vmem:[#allocation2] sm:$0xff] }
  0x2b   :  { %587 = vmatprep.subr.mxu0 %v792_v0  ;;  %v254_v22 = vld [vmem:[#allocation5 + $0xf8] sm:$0xff]  ;;  %v253_v23 = vld [vmem:[#allocation5 + $0xf0] sm:$0xff]  ;;  %v252_v24 = vld [vmem:[#allocation5 + $0xe8] sm:$0xff]  ;;  %p768_p4 = por %p767_p3, %p766_p2 }
  0x2c   :  { %588 = vmatpush3.msra.mxu0 %v66_v3  ;;  %619 = vmatpush3.msra.mxu1 %v254_v22  ;;  %v251_v25 = vld [vmem:[#allocation5 + $0xe0] sm:$0xff]  ;;  %v250_v26 = vld [vmem:[#allocation5 + $0xd8] sm:$0xff]  ;;  %v249_v27 = vld [vmem:[#allocation5 + $0xd0] sm:$0xff] }
  0x2d   :  { %589 = vmatprep.subr.mxu0 %v792_v0  ;;  %620 = vmatprep.subr.mxu1 %v792_v0  ;;  %v248_v28 = vld [vmem:[#allocation5 + $0xc8] sm:$0xff]  ;;  %v247_v29 = vld [vmem:[#allocation5 + $0xc0] sm:$0xff]  ;;  %v246_v30 = vld [vmem:[#allocation5 + $0xb8] sm:$0xff]  ;;  %p769_p5 = pnand %p768_p4, %p762_p1 }
  0x2e   :  { %590 = vmatpush3.msra.mxu0 %v65_v4  ;;  %621 = vmatpush3.msra.mxu1 %v253_v23  ;;  %v245_v31 = vld [vmem:[#allocation5 + $0xb0] sm:$0xff]  ;;  %v244_v32 = vld [vmem:[#allocation5 + $0xa8] sm:$0xff]  ;;  %v243_v33 = vld [vmem:[#allocation5 + $0xa0] sm:$0xff] }
  0x2f   :  { %591 = vmatprep.subr.mxu0 %v792_v0  ;;  %622 = vmatprep.subr.mxu1 %v792_v0  ;;  %v242_v34 = vld [vmem:[#allocation5 + $0x98] sm:$0xff]  ;;  %v241_v35 = vld [vmem:[#allocation5 + $0x90] sm:$0xff]  ;;  %v240_v36 = vld [vmem:[#allocation5 + $0x88] sm:$0xff] }
  0x30   :  { %592 = vmatpush3.msra.mxu0 %v64_v5  ;;  %623 = vmatpush3.msra.mxu1 %v252_v24  ;;  %v239_v37 = vld [vmem:[#allocation5 + $0x80] sm:$0xff]  ;;  %v436_v63 = vld [vmem:[#allocation5 + $0x178] sm:$0xff]  ;;  %v435_v1 = vld [vmem:[#allocation5 + $0x170] sm:$0xff] }
  0x31   :  { %593 = vmatprep.subr.mxu0 %v792_v0  ;;  %624 = vmatprep.subr.mxu1 %v792_v0  ;;  %v139_v48 = vld [vmem:[#allocation7] sm:$0x1]  ;;  %v140_v52 = vld [vmem:[#allocation7 + $0x1] sm:$0x1]  ;;  %v434_v2 = vld [vmem:[#allocation5 + $0x168] sm:$0xff] }
  0x32   :  { %594 = vmatpush3.msra.mxu0 %v63_v6  ;;  %625 = vmatpush3.msra.mxu1 %v251_v25  ;;  %v433_v3 = vld [vmem:[#allocation5 + $0x160] sm:$0xff]  ;;  %v432_v4 = vld [vmem:[#allocation5 + $0x158] sm:$0xff]  ;;  %v431_v5 = vld [vmem:[#allocation5 + $0x150] sm:$0xff] }
  0x33   :  { %595 = vmatprep.subr.mxu0 %v792_v0  ;;  %626 = vmatprep.subr.mxu1 %v792_v0  ;;  %v430_v6 = vld [vmem:[#allocation5 + $0x148] sm:$0xff]  ;;  %v325_v24 = vld [vmem:[#allocation7 + $0x2] sm:$0x1] }
  0x34   :  { %596 = vmatpush3.msra.mxu0 %v62_v7  ;;  %627 = vmatpush3.msra.mxu1 %v250_v26  ;;  %v429_v7 = vld [vmem:[#allocation5 + $0x140] sm:$0xff] }
  0x35   :  { %597 = vmatprep.subr.mxu0 %v792_v0  ;;  %628 = vmatprep.subr.mxu1 %v792_v0 }
  0x36   :  { %598 = vmatpush3.msra.mxu0 %v61_v8  ;;  %629 = vmatpush3.msra.mxu1 %v249_v27  ;;  %v428_v8 = vld [vmem:[#allocation5 + $0x138] sm:$0xff]  ;;  %v326_v27 = vld [vmem:[#allocation7 + $0x3] sm:$0x1] }
  0x37   :  { %599 = vmatprep.subr.mxu0 %v792_v0  ;;  %630 = vmatprep.subr.mxu1 %v792_v0 }
  0x38   :  { %600 = vmatpush3.msra.mxu0 %v60_v9  ;;  %631 = vmatpush3.msra.mxu1 %v248_v28  ;;  %v427_v9 = vld [vmem:[#allocation5 + $0x130] sm:$0xff] }
  0x39   :  { %601 = vmatprep.subr.mxu0 %v792_v0  ;;  %632 = vmatprep.subr.mxu1 %v792_v0 }
  0x3a   :  { %602 = vmatpush3.msra.mxu0 %v59_v10  ;;  %633 = vmatpush3.msra.mxu1 %v247_v29  ;;  %v426_v10 = vld [vmem:[#allocation5 + $0x128] sm:$0xff] }
  0x3b   :  { %603 = vmatprep.subr.mxu0 %v792_v0  ;;  %634 = vmatprep.subr.mxu1 %v792_v0 }
  0x3c   :  { %604 = vmatpush3.msra.mxu0 %v58_v11  ;;  %635 = vmatpush3.msra.mxu1 %v246_v30  ;;  %v425_v11 = vld [vmem:[#allocation5 + $0x120] sm:$0xff] }
  0x3d   :  { %605 = vmatprep.subr.mxu0 %v792_v0  ;;  %636 = vmatprep.subr.mxu1 %v792_v0 }
  0x3e   :  { %606 = vmatpush3.msra.mxu0 %v57_v12  ;;  %637 = vmatpush3.msra.mxu1 %v245_v31  ;;  %v424_v12 = vld [vmem:[#allocation5 + $0x118] sm:$0xff] }
  0x3f   :  { %607 = vmatprep.subr.mxu0 %v792_v0  ;;  %638 = vmatprep.subr.mxu1 %v792_v0 }
  0x40   :  { %608 = vmatpush3.msra.mxu0 %v56_v13  ;;  %639 = vmatpush3.msra.mxu1 %v244_v32  ;;  %v423_v13 = vld [vmem:[#allocation5 + $0x110] sm:$0xff] }
  0x41   :  { %609 = vmatprep.subr.mxu0 %v792_v0  ;;  %640 = vmatprep.subr.mxu1 %v792_v0 }
  0x42   :  { %610 = vmatpush3.msra.mxu0 %v55_v14  ;;  %641 = vmatpush3.msra.mxu1 %v243_v33  ;;  %v422_v14 = vld [vmem:[#allocation5 + $0x108] sm:$0xff] }
  0x43   :  { %611 = vmatprep.subr.mxu0 %v792_v0  ;;  %642 = vmatprep.subr.mxu1 %v792_v0 }
  0x44   :  { %612 = vmatpush3.msra.mxu0 %v54_v15  ;;  %643 = vmatpush3.msra.mxu1 %v242_v34  ;;  %v421_v15 = vld [vmem:[#allocation5 + $0x100] sm:$0xff] }
  0x45   :  { %613 = vmatprep.subr.mxu0 %v792_v0  ;;  %644 = vmatprep.subr.mxu1 %v792_v0  ;;  %v531_v34 = vld [vmem:[#allocation7 + $0x4] ss:$0 sm:$0xff] }
  0x46   :  { %614 = vmatpush3.msra.mxu0 %v53_v16  ;;  %645 = vmatpush3.msra.mxu1 %v241_v35 }
  0x47   :  { %616 = vmatmul.mubr.f32.vlgmr.msra.gmra.mxu0 %v52_v17  ;;  %646 = vmatprep.subr.mxu1 %v792_v0 }
  0x48   :  { %210 = vmatprep.mubr.f32.mxu0 %v792_v0  ;;  %647 = vmatpush3.msra.mxu1 %v240_v36 }
  0x49   :  { %648 = vmatprep.subr.mxu1 %v792_v0 }
  0x4a   :  { %649 = vmatpush3.msra.mxu1 %v239_v37 }
  0x4b   :  { %653 = vmatprep.subr.mxu1 %v792_v0 }
 0x107   :  { %v847_v18 = vpop.f32.mrf.mxu0 }
 0x108   :  { %v141_v19 = vmul.f32 %v847_v18, %v847_v18 }
 0x109   :  { %v617_v20 = vpop.f32.mrf.mxu0 }
 0x10a   :  { %176 = vmatprep.subr.mxu0 %v141_v19 }
 0x10b   :  { %177 = vmatpush1.msra.mxu0 %v847_v18 }
 0x10c   :  { %529 = vmatmul.mubr.msk.f32.vlgmr.msra.gmra.mxu0 %vm142_vm1, %v794_v21 }
 0x10d   :  { %392 = vmatprep.mubr.f32.mxu0 %v792_v0 }
 0x1cc   :  { %v212_v38 = vpop.f32.mrf.mxu0 }
 0x1cd   :  { %v217_v39 = vmul.f32 0.125, %v212_v38 }
 0x1ce   :  { %v214_v40 = vpop.f32.mrf.mxu0 }
 0x1cf   :  { %v219_v41 = vmul.f32 %v217_v39, %v217_v39  ;;  %v218_v42 = vmul.f32 0.125, %v214_v40 }
 0x1d1   :  { %v220_v43 = vsub.f32 %v218_v42, %v219_v41 }
 0x1d3   :  { %v221_v44 = vmax.f32 %v220_v43, 0.0 }
 0x1d5   :  { %v222_v45 = vadd.f32 1e-05, %v221_v44 }
 0x1d7   :  { %697 = vrsqrt.f32 %v222_v45 }
 0x1e4   :  { %v698_v50 = vpop.eup %697 }
 0x1e5   :  { %v224_v51 = vmul.f32 %v698_v50, %v139_v48 }
 0x1e7   :  { %v225_v53 = vmul.f32 %v224_v51, %v217_v39  ;;  %v230_v54 = vrot.slane %v224_v51, %v871_v49 }
 0x1e9   :  { %v226_v55 = vsub.f32 %v140_v52, %v225_v53  ;;  %v231_v56 = vmul.f32 %v230_v54, %v847_v18 }
 0x1eb   :  { %v235_v57 = vrot.slane %v226_v55, %v871_v49 }
 0x1ed   :  { %v236_v58 = vadd.f32 %v235_v57, %v231_v56 }
 0x1ef   :  { %v237_v59 = vmax.f32 %v236_v58, 0.0 }
 0x1f1   :  { %651 = vmatmul.mubr.f32.vlgmr.msra.gmra.mxu1 %v237_v59 }
 0x1f2   :  { %685 = vmatprep.mubr.msk.f32.mxu1 %vm793_vm0, %v792_v0  ;;  %654 = vmatpush3.msra.mxu1 %v436_v63 }
 0x1f3   :  { %655 = vmatprep.subr.mxu1 %v792_v0 }
 0x1f4   :  { %656 = vmatpush3.msra.mxu1 %v435_v1 }
 0x1f5   :  { %657 = vmatprep.subr.mxu1 %v792_v0 }
 0x1f6   :  { %658 = vmatpush3.msra.mxu1 %v434_v2 }
 0x1f7   :  { %659 = vmatprep.subr.mxu1 %v792_v0 }
 0x1f8   :  { %660 = vmatpush3.msra.mxu1 %v433_v3 }
 0x1f9   :  { %661 = vmatprep.subr.mxu1 %v792_v0 }
 0x1fa   :  { %662 = vmatpush3.msra.mxu1 %v432_v4 }
 0x1fb   :  { %663 = vmatprep.subr.mxu1 %v792_v0 }
 0x1fc   :  { %664 = vmatpush3.msra.mxu1 %v431_v5 }
 0x1fd   :  { %665 = vmatprep.subr.mxu1 %v792_v0 }
 0x1fe   :  { %666 = vmatpush3.msra.mxu1 %v430_v6 }
 0x1ff   :  { %667 = vmatprep.subr.mxu1 %v792_v0 }
 0x200   :  { %668 = vmatpush3.msra.mxu1 %v429_v7 }
 0x201   :  { %669 = vmatprep.subr.mxu1 %v792_v0 }
 0x202   :  { %670 = vmatpush3.msra.mxu1 %v428_v8 }
 0x203   :  { %671 = vmatprep.subr.mxu1 %v792_v0 }
 0x204   :  { %672 = vmatpush3.msra.mxu1 %v427_v9 }
 0x205   :  { %673 = vmatprep.subr.mxu1 %v792_v0 }
 0x206   :  { %674 = vmatpush3.msra.mxu1 %v426_v10 }
 0x207   :  { %675 = vmatprep.subr.mxu1 %v792_v0 }
 0x208   :  { %676 = vmatpush3.msra.mxu1 %v425_v11 }
 0x209   :  { %677 = vmatprep.subr.mxu1 %v792_v0 }
 0x20a   :  { %678 = vmatpush3.msra.mxu1 %v424_v12 }
 0x20b   :  { %679 = vmatprep.subr.mxu1 %v792_v0 }
 0x20c   :  { %680 = vmatpush3.msra.mxu1 %v423_v13 }
 0x20d   :  { %681 = vmatprep.subr.mxu1 %v792_v0 }
 0x20e   :  { %682 = vmatpush3.msra.mxu1 %v422_v14 }
 0x20f   :  { %683 = vmatprep.subr.mxu1 %v792_v0 }
 0x210   :  { %684 = vmatpush3.msra.mxu1 %v421_v15 }
 0x2b1   :  { %v878_v60 = vpop.f32.mrf.mxu1 }
 0x2b2   :  { %v327_v61 = vmul.f32 %v878_v60, %v878_v60 }
 0x2b3   :  { %v652_v62 = vpop.f32.mrf.mxu1 }
 0x2b4   :  { %358 = vmatprep.subr.mxu0 %v327_v61 }
 0x2b5   :  { %359 = vmatpush1.msra.mxu0 %v878_v60 }
 0x2b6   :  { %530 = vmatmul.mubr.msk.f32.vlgmr.msra.gmra.mxu0 %vm142_vm1, %v794_v21 }
 0x376   :  { %v394_v16 = vpop.f32.mrf.mxu0 }
 0x377   :  { %v399_v17 = vmul.f32 0.125, %v394_v16 }
 0x378   :  { %v396_v18 = vpop.f32.mrf.mxu0 }
 0x379   :  { %v401_v19 = vmul.f32 %v399_v17, %v399_v17  ;;  %v400_v20 = vmul.f32 0.125, %v396_v18 }
 0x37b   :  { %v402_v21 = vsub.f32 %v400_v20, %v401_v19 }
 0x37d   :  { %v403_v22 = vmax.f32 %v402_v21, 0.0 }
 0x37f   :  { %v404_v23 = vadd.f32 1e-05, %v403_v22 }
 0x381   :  { %699 = vrsqrt.f32 %v404_v23 }
 0x38e   :  { %v700_v25 = vpop.eup %699 }
 0x38f   :  { %v406_v26 = vmul.f32 %v700_v25, %v325_v24 }
 0x391   :  { %v407_v28 = vmul.f32 %v406_v26, %v399_v17  ;;  %v412_v29 = vrot.slane %v406_v26, %v871_v49 }
 0x393   :  { %v408_v30 = vsub.f32 %v326_v27, %v407_v28  ;;  %v413_v0 = vmul.f32 %v412_v29, %v878_v60 }
 0x395   :  { %v417_v31 = vrot.slane %v408_v30, %v871_v49 }
 0x397   :  { %v418_v32 = vadd.f32 %v417_v31, %v413_v0 }
 0x399   :  { %v419_v33 = vmax.f32 %v418_v32, 0.0 }
 0x39b   :  { %686 = vmatmul.mubr.f32.vlgmr.msra.gmra.mxu1 %v419_v33 }
 0x45b   :  { %v508_v35 = vpop.f32.mrf.mxu1 }
 0x45c   :  { %v509_v36 = vadd.f32 %v531_v34, %v508_v35 }
 0x45d   :  { %v687_v37 = vpop.f32.mrf.mxu1 }
 0x45e   :  { %512 = vst [vmem:[#allocation8] sm:$0xff] %v509_v36 }
 0x45f   :  { %772 = shalt.err (!%p769_p5)
}
 0x460   :  { %522 = dma.vmem_to_hbm [thread:$0]  %s520_s2, 128, %s909_s3, [#allocation4]  }
 0x461   :  { %785 = dma.done.wait [#allocation4], 128  }
 0x462   :  { %786 = vsyncadd [#allocation4], 4294967168 }
 0x463   :  { %526 = vsyncpa [#allocation3], 1 }
 0x464   :  { %527 = vsyncpa [#allocation6], 1 }
 0x465   :  { %528 = vsyncpa [#allocation4], 1 }

</bundles_post_ra>
